<compile_context>
chip_gen: v6e
topology: v6e:2x2x1
jax: 0.10.0
libtpu: 0.0.40
codegen_flags: <defaults>
</compile_context>

<pallas_src>
import functools

import jax
import jax.numpy as jnp
from jax.experimental import pallas as pl
from jax.experimental.pallas import tpu as pltpu

EPS = 1e-5  # PyTorch BatchNorm default eps


# ---------------------------------------------------------------------------
# Kernels
# ---------------------------------------------------------------------------
def _spawn_full_kernel(x_ref,        # [nb, C, HW]  multi-sample block, full spatial extent
                       scale2_ref,   # [C, 1]       folded BN2d scale (specialist-averaged)
                       shift2_ref,   # [C, 1]       folded BN2d shift
                       wht_ref,      # [C, K]       folded BN1d+Linear weight (transposed)
                       bh_ref,       # [1, K]       folded BN1d+Linear bias
                       out_ref,      # [nb, 1, K]
                       *, inv_hw):
    x = x_ref[...].astype(jnp.float32)                                   # [nb, C, HW]
    h = jnp.maximum(x * scale2_ref[...] + shift2_ref[...], 0.0)          # BN2d fold + ReLU
    pooled = jnp.sum(h, axis=-1) * inv_hw                                # [nb, C] global avg pool
    # One batched MXU GEMM per block (covers nb samples), BN1d already folded in.
    logits = jnp.dot(pooled, wht_ref[...],
                     preferred_element_type=jnp.float32) + bh_ref[...]   # [nb, K]
    out_ref[...] = logits[:, None, :].astype(out_ref.dtype)              # [nb, 1, K] lane-dense K


def _spawn_tiled_kernel(x_ref,       # [1, C, hw_tile]
                        scale2_ref,  # [C, 1]
                        shift2_ref,  # [C, 1]
                        wht_ref,     # [C, K]
                        bh_ref,      # [1, K]
                        out_ref,     # [1, 1, K]
                        acc_ref,     # VMEM scratch [C, 1] f32 : pooled-sum accumulator
                        *, inv_hw, hw_total, hw_tile):
    t = pl.program_id(1)

    @pl.when(t == 0)
    def _init():
        acc_ref[...] = jnp.zeros_like(acc_ref)

    x = x_ref[0].astype(jnp.float32)                                     # [C, hw_tile]
    h = jnp.maximum(x * scale2_ref[...] + shift2_ref[...], 0.0)
    if hw_total % hw_tile != 0:
        # ragged last tile: mask out the padded lanes (static Python guard,
        # so the mask is only compiled when HW is not tile-divisible).
        col = jax.lax.broadcasted_iota(jnp.int32, h.shape, 1) + t * hw_tile
        h = jnp.where(col < hw_total, h, 0.0)
    acc_ref[...] += jnp.sum(h, axis=-1, keepdims=True)                   # [C, 1]

    @pl.when(t == pl.num_programs(1) - 1)
    def _finalize():
        pooled_col = acc_ref[...] * inv_hw                               # [C, 1]
        # VPU broadcast-mul + XLU sublane reduce: no per-sample MXU warm-up.
        logits = jnp.sum(wht_ref[...] * pooled_col, axis=0,
                         keepdims=True) + bh_ref[...]                    # [1, K]
        out_ref[...] = logits[None].astype(out_ref.dtype)                # [1, 1, K]


# ---------------------------------------------------------------------------
# Tiling / VMEM planning
# ---------------------------------------------------------------------------
def _vmem_limit_bytes():
    """Generation-aware scoped-VMEM limit (~75% of physical)."""
    try:
        cap = pltpu.get_tpu_info().vmem_capacity_bytes
    except Exception:
        cap = 64 << 20                     # conservative (v7x physical)
    # v7x (64 MiB phys) -> 48 MiB ; v5e/v6e (128 MiB phys) -> 96 MiB.
    return max(32 << 20, int(cap) * 3 // 4)


# ---------------------------------------------------------------------------
# Wrapper
# ---------------------------------------------------------------------------
def fold_spawned_params(params):
    """All parameter-only math, done ONCE outside the kernel (exact algebra)."""
    # specialist averaging (eval-mode ensemble is linear in the perturbed params)
    w2 = jnp.mean(params["bn2_w"], axis=0)
    b2 = jnp.mean(params["bn2_b"], axis=0)
    w1 = jnp.mean(params["bn1_w"], axis=0)
    b1 = jnp.mean(params["bn1_b"], axis=0)
    w_fc = jnp.mean(params["fc_w"], axis=0)          # [K, C] (PyTorch Linear layout)
    b_fc = jnp.mean(params["fc_b"], axis=0)          # [K]

    m2, v2 = params["bn2_stats"][0], params["bn2_stats"][1]
    m1, v1 = params["bn1_stats"][0], params["bn1_stats"][1]

    # BN2d fold: h = x*scale2 + shift2
    inv_std2 = jax.lax.rsqrt(v2 + EPS)
    scale2 = w2 * inv_std2
    shift2 = b2 - m2 * scale2

    # BN1d -> Linear fold: out = pooled @ (W * s1)^T + (W @ sh1 + b)
    inv_std1 = jax.lax.rsqrt(v1 + EPS)
    s1 = w1 * inv_std1
    sh1 = b1 - m1 * s1
    w_head = w_fc * s1[None, :]                      # [K, C]
    b_head = w_fc @ sh1 + b_fc                       # [K]

    C = scale2.shape[0]
    K = b_head.shape[0]
    return {
        "scale2": scale2.reshape(C, 1).astype(jnp.float32),
        "shift2": shift2.reshape(C, 1).astype(jnp.float32),
        "w_head_t": w_head.T.astype(jnp.float32),            # [C, K] (lane-dense K)
        "b_head": b_head.reshape(1, K).astype(jnp.float32),   # [1, K]
    }


def spawn_forward(x_nchw, folded):
    """Eval-mode forward of the spawned ensemble. x_nchw: [N, C, H, W] (f32 or bf16)."""
    N, C, H, W = x_nchw.shape
    K = folded["b_head"].shape[-1]
    HW = H * W
    itemsize = jnp.dtype(x_nchw.dtype).itemsize

    # Pure reshape (no data movement): spatial dim lands on the lane axis.
    x = x_nchw.reshape(N, C, HW)

    vmem_limit = _vmem_limit_bytes()
    # MiB-scale per-buffer target (double-buffered by the pipeline -> <= vmem/2).
    per_buffer_target = min(8 << 20, max(1 << 20, vmem_limit // 4))
    per_sample_bytes = C * HW * itemsize

    scale2, shift2 = folded["scale2"], folded["shift2"]
    w_head_t, b_head = folded["w_head_t"], folded["b_head"]

    if per_sample_bytes <= per_buffer_target:
        # ---- fast path: full HW per block, multiple samples folded per block ----
        nb_cap = max(1, per_buffer_target // per_sample_bytes)
        # keep >=2 blocks when N>=2 so the "parallel" axis feeds both v7x cores
        # (and the pipeline has something to double-buffer); ~0.35us/step is noise.
        nb_cap = max(1, min(nb_cap, max(1, N // 2)))
        nb = 1
        for d in range(min(N, nb_cap), 0, -1):
            if N % d == 0:
                nb = d
                break

        out = pl.pallas_call(
            functools.partial(_spawn_full_kernel, inv_hw=1.0 / HW),
            out_shape=jax.ShapeDtypeStruct((N, 1, K), jnp.float32),
            grid=(N // nb,),
            in_specs=[
                pl.BlockSpec((nb, C, HW), lambda i: (i, 0, 0)),   # one contiguous DMA per block
                pl.BlockSpec((C, 1), lambda i: (0, 0)),
                pl.BlockSpec((C, 1), lambda i: (0, 0)),
                pl.BlockSpec((C, K), lambda i: (0, 0)),
                pl.BlockSpec((1, K), lambda i: (0, 0)),
            ],
            out_specs=pl.BlockSpec((nb, 1, K), lambda i: (i, 0, 0)),
            compiler_params=pltpu.CompilerParams(
                dimension_semantics=("parallel",),
                vmem_limit_bytes=vmem_limit,
            ),
        )(x, scale2, shift2, w_head_t, b_head)
    else:
        # ---- fallback: per-sample HW streaming with a byte-derived tile ----
        hw_tile = (per_buffer_target // (C * itemsize)) // 128 * 128
        hw_tile = max(128, hw_tile)            # 128-multiple lanes -> unmasked loads
        n_tiles = -(-HW // hw_tile)            # cdiv; ragged last tile masked in-kernel

        out = pl.pallas_call(
            functools.partial(_spawn_tiled_kernel, inv_hw=1.0 / HW,
                              hw_total=HW, hw_tile=hw_tile),
            out_shape=jax.ShapeDtypeStruct((N, 1, K), jnp.float32),
            grid=(N, n_tiles),
            in_specs=[
                pl.BlockSpec((1, C, hw_tile), lambda n, t: (n, 0, t)),
                pl.BlockSpec((C, 1), lambda n, t: (0, 0)),
                pl.BlockSpec((C, 1), lambda n, t: (0, 0)),
                pl.BlockSpec((C, K), lambda n, t: (0, 0)),
                pl.BlockSpec((1, K), lambda n, t: (0, 0)),
            ],
            out_specs=pl.BlockSpec((1, 1, K), lambda n, t: (n, 0, 0)),
            scratch_shapes=[pltpu.VMEM((C, 1), jnp.float32)],
            compiler_params=pltpu.CompilerParams(
                dimension_semantics=("parallel", "arbitrary"),  # reduction axis last
                vmem_limit_bytes=vmem_limit,
            ),
        )(x, scale2, shift2, w_head_t, b_head)
        # TODO(synk): if N==1 and HW is huge, split HW across a leading "parallel"
        #             axis (two-stage reduce) so both v7x TensorCores stream data.

    return out.reshape(N, K)


# ---------------- parameter construction (plain JAX glue) ----------------
def _perturb(key, param, num_specialist, noise_std):
    # matches convert_specialist._perturbation: randn_like * (rms(param) * std)
    rms = jnp.sqrt(jnp.mean(param.astype(jnp.float32) ** 2))
    noise = jax.random.normal(key, (num_specialist,) + param.shape, jnp.float32)
    return param[None] + noise * rms * noise_std


def make_spawned_params(key, C, K, num_specialist, noise_std):
    ks = jax.random.split(key, 11)
    # pretend-pretrained base parameters (deterministic)
    bn2_w = jax.random.uniform(ks[0], (C,), jnp.float32, 0.5, 1.5)
    bn2_b = 0.1 * jax.random.normal(ks[1], (C,), jnp.float32)
    bn2_mean = 0.2 * jax.random.normal(ks[2], (C,), jnp.float32)
    bn2_var = jax.random.uniform(ks[3], (C,), jnp.float32, 0.5, 1.5)

    bn1_w = jax.random.uniform(ks[4], (C,), jnp.float32, 0.5, 1.5)
    bn1_b = 0.1 * jax.random.normal(ks[5], (C,), jnp.float32)
    bn1_mean = 0.2 * jax.random.normal(ks[6], (C,), jnp.float32)
    bn1_var = jax.random.uniform(ks[7], (C,), jnp.float32, 0.5, 1.5)

    fc_w = jax.random.normal(ks[8], (K, C), jnp.float32) / jnp.sqrt(C)  # PyTorch Linear: [out, in]
    fc_b = 0.1 * jax.random.normal(ks[9], (K,), jnp.float32)

    # spawn specialists (convert_specialist over BN2d, BN1d, and the head Linear)
    kp = jax.random.split(ks[10], 6)
    return {
        "bn2_stats": jnp.stack([bn2_mean, bn2_var]),                 # [2, C]
        "bn2_w": _perturb(kp[0], bn2_w, num_specialist, noise_std),  # [S, C]
        "bn2_b": _perturb(kp[1], bn2_b, num_specialist, noise_std),
        "bn1_stats": jnp.stack([bn1_mean, bn1_var]),
        "bn1_w": _perturb(kp[2], bn1_w, num_specialist, noise_std),
        "bn1_b": _perturb(kp[3], bn1_b, num_specialist, noise_std),
        "fc_w": _perturb(kp[4], fc_w, num_specialist, noise_std),    # [S, K, C]
        "fc_b": _perturb(kp[5], fc_b, num_specialist, noise_std),    # [S, K]
    }


# ---------------- pure-JAX reference (eval-mode per-module averaging) ----------------
def ref_forward(x_nchw, p):
    S = p["bn2_w"].shape[0]
    x = jnp.transpose(x_nchw, (0, 2, 3, 1)).astype(jnp.float32)            # NHWC
    m2, v2 = p["bn2_stats"][0], p["bn2_stats"][1]
    xn2 = (x - m2) / jnp.sqrt(v2 + EPS)
    bn2 = 0.0
    for s in range(S):
        bn2 = bn2 + (xn2 * p["bn2_w"][s] + p["bn2_b"][s]) / S
    h = jnp.maximum(bn2, 0.0)
    pooled = jnp.mean(h, axis=(1, 2))                                      # [N, C]
    m1, v1 = p["bn1_stats"][0], p["bn1_stats"][1]
    pn1 = (pooled - m1) / jnp.sqrt(v1 + EPS)
    bn1 = 0.0
    for s in range(S):
        bn1 = bn1 + (pn1 * p["bn1_w"][s] + p["bn1_b"][s]) / S
    out = 0.0
    for s in range(S):
        out = out + (bn1 @ p["fc_w"][s].T + p["fc_b"][s]) / S
    return out


if __name__ == "__main__":
    N, C, H, W = 2, 8, 16, 16
    K = 10                 # classifier head outputs
    S = 3                  # num_specialist
    noise_std = 0.1

    key = jax.random.PRNGKey(0)
    kx, kp = jax.random.split(key)
    x = jax.random.normal(kx, (N, C, H, W), jnp.float32)   # PyTorch-style NCHW input
    params = make_spawned_params(kp, C, K, S, noise_std)
    folded = fold_spawned_params(params)                   # parameter-only math, once

    out = spawn_forward(x, folded)
    out = jax.block_until_ready(out)

    ref = ref_forward(x, params)
    assert out.shape == (N, K)
    assert jnp.allclose(out, ref, rtol=1e-4, atol=1e-4), (out, ref)

    print("KERNEL_OK")
</pallas_src>

<mosaic_0001>
module attributes {stable_mosaic.version = 11 : i64} {
  func.func @_spawn_full_kernel(%arg0: i32, %arg1: memref<1x8x256xf32, #tpu.memory_space<vmem>>, %arg2: memref<8x1xf32, #tpu.memory_space<vmem>>, %arg3: memref<8x1xf32, #tpu.memory_space<vmem>>, %arg4: memref<8x10xf32, #tpu.memory_space<vmem>>, %arg5: memref<1x10xf32, #tpu.memory_space<vmem>>, %arg6: memref<1x1x10xf32, #tpu.memory_space<vmem>>) attributes {dimension_semantics = [#tpu.dimension_semantics<parallel>], iteration_bounds = array<i64: 2>, scalar_prefetch = 0 : i64, scratch_operands = 0 : i64, tpu.core_type = #tpu.core_type<tc>, window_params = [{transform_indices = @transform_0, window_bounds = array<i64: 1, 8, 256>}, {pipeline_mode = #tpu.pipeline_mode<synchronous>, transform_indices = @transform_1, window_bounds = array<i64: 8, 1>}, {pipeline_mode = #tpu.pipeline_mode<synchronous>, transform_indices = @transform_2, window_bounds = array<i64: 8, 1>}, {pipeline_mode = #tpu.pipeline_mode<synchronous>, transform_indices = @transform_3, window_bounds = array<i64: 8, 10>}, {pipeline_mode = #tpu.pipeline_mode<synchronous>, transform_indices = @transform_4, window_bounds = array<i64: 1, 10>}, {transform_indices = @transform_5, window_bounds = array<i64: 1, 1, 10>}]} {
    %c0 = arith.constant 0 : index
    %c0_0 = arith.constant 0 : index
    %c0_1 = arith.constant 0 : index
    %0 = vector.load %arg1[%c0, %c0_0, %c0_1] : memref<1x8x256xf32, #tpu.memory_space<vmem>>, vector<1x8x256xf32>
    %c0_2 = arith.constant 0 : index
    %c0_3 = arith.constant 0 : index
    %1 = vector.load %arg2[%c0_2, %c0_3] : memref<8x1xf32, #tpu.memory_space<vmem>>, vector<8x1xf32>
    %2 = vector.shape_cast %1 : vector<8x1xf32> to vector<1x8x1xf32>
    %3 = vector.broadcast %2 : vector<1x8x1xf32> to vector<1x8x256xf32>
    %4 = arith.mulf %0, %3 : vector<1x8x256xf32>
    %c0_4 = arith.constant 0 : index
    %c0_5 = arith.constant 0 : index
    %5 = vector.load %arg3[%c0_4, %c0_5] : memref<8x1xf32, #tpu.memory_space<vmem>>, vector<8x1xf32>
    %6 = vector.shape_cast %5 : vector<8x1xf32> to vector<1x8x1xf32>
    %7 = vector.broadcast %6 : vector<1x8x1xf32> to vector<1x8x256xf32>
    %8 = arith.addf %4, %7 : vector<1x8x256xf32>
    %cst = arith.constant 0.000000e+00 : f32
    %9 = vector.broadcast %cst : f32 to vector<1x8x256xf32>
    %10 = arith.maximumf %8, %9 : vector<1x8x256xf32>
    %cst_6 = arith.constant dense<0.000000e+00> : vector<1x8xf32>
    %11 = vector.multi_reduction <add>, %10, %cst_6 [2] : vector<1x8x256xf32> to vector<1x8xf32>
    %cst_7 = arith.constant 3.906250e-03 : f32
    %12 = vector.broadcast %cst_7 : f32 to vector<1x8xf32>
    %13 = arith.mulf %11, %12 : vector<1x8xf32>
    %c0_8 = arith.constant 0 : index
    %c0_9 = arith.constant 0 : index
    %14 = vector.load %arg4[%c0_8, %c0_9] : memref<8x10xf32, #tpu.memory_space<vmem>>, vector<8x10xf32>
    %cst_10 = arith.constant dense<0.000000e+00> : vector<1x10xf32>
    %15 = tpu.matmul %13, %14, %cst_10 {dimension_numbers = #tpu.dot_dimension_numbers<[1], [0], [0], [1], [0, 0, 1, 1], [], []>} : vector<1x8xf32>, vector<8x10xf32>, vector<1x10xf32> -> vector<1x10xf32>
    %c0_11 = arith.constant 0 : index
    %c0_12 = arith.constant 0 : index
    %16 = vector.load %arg5[%c0_11, %c0_12] : memref<1x10xf32, #tpu.memory_space<vmem>>, vector<1x10xf32>
    %17 = arith.addf %15, %16 : vector<1x10xf32>
    %18 = vector.shape_cast %17 : vector<1x10xf32> to vector<1x1x10xf32>
    %c0_13 = arith.constant 0 : index
    %c0_14 = arith.constant 0 : index
    %c0_15 = arith.constant 0 : index
    %19 = vector.load %arg6[%c0_13, %c0_14, %c0_15] : memref<1x1x10xf32, #tpu.memory_space<vmem>>, vector<1x1x10xf32>
    tpu.vector_store %arg6[%c0_13, %c0_14, %c0_15], %18 {strides = array<i32>} : memref<1x1x10xf32, #tpu.memory_space<vmem>>, vector<1x1x10xf32>,
    return
  }
  func.func @transform_0(%arg0: i32) -> (i32, i32, i32) {
    %c0_i32 = arith.constant 0 : i32
    %c0_i32_0 = arith.constant 0 : i32
    %c0_i32_1 = arith.constant 0 : i32
    return %arg0, %c0_i32, %c0_i32_0 : i32, i32, i32
  }
  func.func @transform_1(%arg0: i32) -> (i32, i32) {
    %c0_i32 = arith.constant 0 : i32
    %c0_i32_0 = arith.constant 0 : i32
    %c0_i32_1 = arith.constant 0 : i32
    return %c0_i32, %c0_i32_0 : i32, i32
  }
  func.func @transform_2(%arg0: i32) -> (i32, i32) {
    %c0_i32 = arith.constant 0 : i32
    %c0_i32_0 = arith.constant 0 : i32
    %c0_i32_1 = arith.constant 0 : i32
    return %c0_i32, %c0_i32_0 : i32, i32
  }
  func.func @transform_3(%arg0: i32) -> (i32, i32) {
    %c0_i32 = arith.constant 0 : i32
    %c0_i32_0 = arith.constant 0 : i32
    %c0_i32_1 = arith.constant 0 : i32
    return %c0_i32, %c0_i32_0 : i32, i32
  }
  func.func @transform_4(%arg0: i32) -> (i32, i32) {
    %c0_i32 = arith.constant 0 : i32
    %c0_i32_0 = arith.constant 0 : i32
    %c0_i32_1 = arith.constant 0 : i32
    return %c0_i32, %c0_i32_0 : i32, i32
  }
  func.func @transform_5(%arg0: i32) -> (i32, i32, i32) {
    %c0_i32 = arith.constant 0 : i32
    %c0_i32_0 = arith.constant 0 : i32
    %c0_i32_1 = arith.constant 0 : i32
    return %arg0, %c0_i32, %c0_i32_0 : i32, i32, i32
  }
}

</mosaic_0001>

<bundles_post_ra>
// kernel: tpu_custom_call.1
= control target key start
LH: loop header
LB: loop body
LE: loop exit
PB: predicated region body
PF: predicated region fallthrough
CT: control target
= control target key end

     0   :  { %10 = vsyncpa [#allocation3], 0  ;;  %s786_s0 = inlined_call_operand.hbm [shape: f32[2,8,256], index: 0, kind: input, shape index: {}]   ;;  %s787_s1 = inlined_call_operand.vmem [shape: f32[8,1], index: 1, kind: input, shape index: {}]   ;;  %s788_s2 = inlined_call_operand.vmem [shape: f32[8,1], index: 2, kind: input, shape index: {}]   ;;  %s789_s3 = inlined_call_operand.vmem [shape: f32[8,10], index: 3, kind: input, shape index: {}]   ;;  %s790_s4 = inlined_call_operand.vmem [shape: f32[1,10], index: 4, kind: input, shape index: {}]   ;;  %s791_s5 = inlined_call_operand.hbm [shape: f32[2,1,10], index: 5, kind: output, shape index: {}]  }
   0x1   :  { %12 = vsyncpa [#allocation3 + $0x1], 0 }
   0x2   :  { %13 = vsyncpa [#allocation4], 0 }
   0x3   :  { %15 = vsyncpa [#allocation4 + $0x1], 0  ;;  %s626_s18 = smov 0   ;;  %s628_s19 = smov 0  }
   0x4   :  { %s630_s20 = smov 0   ;;  %s632_s21 = smov 0  }
   0x5 LB: > { %s647_s22 = sadd.s32 4294967295, %s589_s21   ;;  %s427_s23 = sadd.s32 4294967294, %s589_s21   ;;  %s589_s21 = sphi %s632_s21, %s808_s21   ;;  %s585_s20 = sphi %s630_s20, %s807_s20   ;;  %s581_s19 = sphi %s628_s19, %s806_s19   ;;  %s577_s18 = sphi %s626_s18, %s805_s18  }
   0x6   : > { %s651_s24 = sadd.s32 1, %s589_s21   ;;  %s28_s25 = sadd.s32 1, %s585_s20 }
   0x7   : > { %s25_s26 = ssub.s32 %s589_s21, %s651_s24  ;;  %p35_p0 = scmp.ne.s32.totalorder %s585_s20, %s581_s19 }
   0x8   : > { %p26_p1 = scmp.eq.s32.totalorder %s25_s26, 0  ;;  %p36_p2 = scmp.eq.s32.totalorder %s589_s21, 0 }
   0x9   : > { %p41_p3 = scmp.ne.s32.totalorder %s581_s19, %s577_s18  ;;  %p42_p4 = scmp.eq.s32.totalorder %s647_s22, 0 }
   0xa   : > { %s663_s27 = scalar_select %p26_p1, %s585_s20, %s28_s25  }
   0xb   : > { %p665_p5 = por %p36_p2, %p35_p0  ;;  %p669_p6 = por %p42_p4, %p41_p3 }
   0xc   : > { %p149_p7 = scmp.eq.s32.totalorder %s647_s22, 1  ;;  %p155_p8 = scmp.eq.s32.totalorder %s427_s23, 1 }
   0xd   : > { %s795_s29 = scalar_select %p669_p6, 1, 0 }
   0xe   : > { %p459_p10 = scmp.lt.s32.totalorder %s589_s21, 2  ;;  %p676_p11 = por %p149_p7, %p35_p0 }
   0xf   : > { %p680_p12 = por %p155_p8, %p41_p3  ;;  %s187_s7 = sand.u32 1, %s585_s20  }
  0x10   : > { %s796_s30 = scalar_select %p676_p11, 1, 0 }
  0x11   : > { %s797_s6 = scalar_select %p680_p12, 1, 0 }
  0x12   : > { %s439_s8 = sshll.u32 %s589_s21, 8  ;;  %s430_s9 = sshll.u32 %s187_s7, 4 }
  0x13   : > { %s689_s12 = scalar_lea.hbm %s786_s0, %s439_s8  ;;  %s191_s13 = scalar_lea.vmem [#allocation2], %s430_s9 }
  0x14   : > { %s199_s14 = sshll.u32 %s191_s13, 4  ;;  %p693_p13 = pnand %p459_p10, %p665_p5  ;;  %s697_s14 = int_to_ptr.vmem [resolvable:$true] %s199_s14 }
  0x15   : > { %s188_s16 = scalar_lea.sflag [#allocation3], %s187_s7  ;;  %s497_s17 = scalar_lea.hbm %s689_s12, 256 }
  0x16   : > { %p498_p2 = scmp.ne.s32.totalorder %s689_s12, %s497_s17  ;;  %p499_p3 = pneg %p693_p13 }
  0x17   : > { %s502_s26 = scalar_lea.hbm %s786_s0, 512  ;;  %p503_p5 = scmp.lt.s32.totalorder %s689_s12, %s786_s0 }
  0x18   : > { %p500_p4 = pnand %p499_p3, %p498_p2  ;;  %p504_p8 = scmp.lt.s32.totalorder %s502_s26, %s497_s17 }
  0x1a   : > { %p501_p7 = pneg %p500_p4  ;;  %p505_p10 = por %p504_p8, %p503_p5 }
  0x1c   : > { %p506_p9 = pnand %p505_p10, %p501_p7 }
  0x1e   : > { %509 = shalt.err (!%p506_p9)
}
  0x1f   : > { %s510_s7 = scalar_lea.vmem %s697_s14, 256  ;;  %s591_s9 = smov [#allocation2]  }
  0x20   : > { %p511_p0 = scmp.ne.s32.totalorder %s697_s14, %s510_s7  ;;  %s515_s10 = sshll.u32 %s591_s9, 4  ;;  %s516_s10 = int_to_ptr.vmem [resolvable:$false] %s515_s10 }
  0x21   : > { %s517_s11 = scalar_lea.vmem %s516_s10, 512  ;;  %p518_p4 = scmp.lt.s32.totalorder %s697_s14, %s516_s10 }
  0x22   : > { %p513_p1 = pnand %p511_p0, %p499_p3  ;;  %p519_p12 = scmp.lt.s32.totalorder %s517_s11, %s510_s7 }
  0x24   : > { %p514_p2 = pneg %p513_p1  ;;  %p520_p11 = por %p519_p12, %p518_p4 }
  0x26   : > { %p521_p6 = pnand %p520_p11, %p514_p2 }
  0x28   : > { %524 = shalt.err (!%p521_p6)
}
  0x29   : > { %454 = dma.hbm_to_vmem [thread:$0]  (!%p693_p13), %s689_s12, 256, %s697_s14, %s188_s16  }
  0x2a   : > { %p799_p9 = scmp.lt.s32.totalorder %s589_s21, 3  ;;  %p800_p7 = scmp.ge.s32.totalorder %s589_s21, 1 }
  0x2c   : > { %p205_p0 = pnand %p800_p7, %p799_p9 }
  0x2d   : > { %s724_s13 = sand.u32 (!%p205_p0), 1, %s581_s19   ;;  %p801_p6 = scmp.ne.s32.totalorder (!%p205_p0), %s795_s29, 0 }
  0x2e   : > { %208 = sbr.rel (%p205_p0) target bundleno = 538 (0x21a), region = 40  ;;  %s434_s17 = sshll.u32 (!%p205_p0), %s724_s13, 4 }
  0x2f   : > { %s211_s23 = scalar_lea.sflag (!%p205_p0), [#allocation3], %s724_s13  ;;  %s214_s25 = scalar_lea.vmem (!%p205_p0), [#allocation2], %s434_s17 }
  0x33   : > { %568 = dma.done.wait (%p801_p6), %s211_s23, 256  }
  0x34   : > { %570 = vsyncadd (%p801_p6), %s211_s23, 4294967040  ;;  %v592_v0 = vmov 0   ;;  %v242_v1 = vld [vmem:[%s787_s1] sm:$0xff]  ;;  %v241_v5 = vld [vmem:[%s214_s25 + $0x8] sm:$0xff]  ;;  %v593_v14 = vmov 0.0   ;;  %vm594_vm0 = vmmov 0   ;;  %v267_v16 = vlaneseq }
  0x35   : > { %496 = vset.pattern.permute.xlu0 %v592_v0  ;;  %v250_v2 = vld [vmem:[%s788_s2] sm:$0xff]  ;;  %442 = vmatprep.subr.mxu0 %v593_v14  ;;  %vm273_vm1 = vcmask 64512   ;;  %s436_s7 = sshll.u32 %s647_s22, 4  ;;  %s239_s9 = scalar_lea.vmem [#allocation5], %s724_s13  ;;  %vm346_vm2 = vcmask 73728  }
  0x36   : > { %245 = vperm.xlu0 %496, %v242_v1   ;;  %v240_v4 = vld [vmem:[%s214_s25] sm:$0xff]  ;;  %444 = vmatprep.mubr.msk.f32.mxu0 %vm594_vm0, %v593_v14  ;;  %v268_v17 = vand.u32 127, %v267_v16  ;;  %v270_v18 = vshrl.u32 %v267_v16, 7  ;;  %s361_s10 = sshll.u32 %s239_s9, 4  ;;  %s749_s23 = scalar_lea.hbm %s791_s5, %s436_s7  ;;  %s362_s10 = int_to_ptr.vmem [resolvable:$true] %s361_s10 }
  0x37   : > { %v264_v15 = vld [vmem:[%s789_s3] sm:$0xff]  ;;  %s349_s25 = scalar_lea.sflag [#allocation4], %s724_s13  ;;  %s525_s12 = scalar_lea.vmem %s362_s10, 16 }
  0x38   : > { %443 = vmatpush3.msra.mxu0 %v264_v15  ;;  %v271_v19 = vsub.s32 %v268_v17, %v270_v18  ;;  %v265_v23 = vld [vmem:[%s790_s4] sm:$0x1]  ;;  %p526_p11 = scmp.ne.s32.totalorder %s362_s10, %s525_s12  ;;  %p802_p12 = scmp.ne.s32.totalorder %s796_s30, 0 }
  0x39   : > { %s595_s22 = smov [#allocation5]  }
  0x3a   : > { %253 = vperm.xlu0 %496, %v250_v2   ;;  %p527_p13 = pnand %p526_p11, %p802_p12  ;;  %s529_s14 = sshll.u32 %s595_s22, 4  ;;  %s530_s14 = int_to_ptr.vmem [resolvable:$false] %s529_s14 }
  0x3b   : > { %s531_s15 = scalar_lea.vmem %s530_s14, 32  ;;  %p532_p3 = scmp.lt.s32.totalorder %s362_s10, %s530_s14 }
  0x3c   : > { %p528_p1 = pneg %p527_p13  ;;  %p533_p5 = scmp.lt.s32.totalorder %s531_s15, %s525_s12 }
  0x3e   : > { %p534_p8 = por %p533_p5, %p532_p3 }
  0x40   : > { %p535_p10 = pnand %p534_p8, %p528_p1 }
  0xb1   : > { %v246_v3 = vpop.permute.xlu0 %245 }
  0xb2   : > { %v248_v6 = vmul.f32 %v246_v3, %v240_v4  ;;  %v249_v7 = vmul.f32 %v246_v3, %v241_v5 }
  0xb5   : > { %v254_v8 = vpop.permute.xlu0 %253 }
  0xb6   : > { %v256_v9 = vadd.f32 %v254_v8, %v248_v6  ;;  %v257_v10 = vadd.f32 %v254_v8, %v249_v7 }
  0xb8   : > { %v258_v11 = vmax.f32 %v256_v9, 0.0  ;;  %v259_v12 = vmax.f32 %v257_v10, 0.0 }
  0xba   : > { %v260_v13 = vadd.f32 %v259_v12, %v258_v11 }
  0xbc   : > { %261 = vadd.xlane.f32.xlu1 %v260_v13 }
 0x145   : > { %v262_v20 = vpop.xlane.xlu1 %261 }
 0x146   : > { %v263_v21 = vmul.f32 0.00390625, %v262_v20 }
 0x148   : > { %v272_v22 = vrot.slane %v263_v21, %v271_v19 }
 0x14a   : > { %445 = vmatmul.mubr.msk.f32.vlgmr.msra.gmra.mxu0 %vm273_vm1, %v272_v22 }
 0x20a   : > { %v342_v24 = vpop.f32.mrf.mxu0 }
 0x20b   : > { %v343_v25 = vadd.f32 %v342_v24, %v265_v23 }
 0x20c   : > { %v446_v26 = vpop.f32.mrf.mxu0 }
 0x20d   : > { %347 = vst.msk [vmem:[%s239_s9] sm:$0x1] %vm346_vm2, %v343_v25 }
 0x20e   : > { %538 = shalt.err (!%p535_p10)
}
 0x20f   : > { %s539_s16 = scalar_lea.hbm %s749_s23, 16  ;;  %s543_s26 = scalar_lea.hbm %s791_s5, 32 }
 0x210   : > { %p540_p2 = scmp.ne.s32.totalorder %s749_s23, %s539_s16  ;;  %p544_p7 = scmp.lt.s32.totalorder %s749_s23, %s791_s5 }
 0x211   : > { %p545_p0 = scmp.lt.s32.totalorder %s543_s26, %s539_s16 }
 0x212   : > { %p541_p4 = pnand %p540_p2, %p802_p12 }
 0x213   : > { %p546_p6 = por %p545_p0, %p544_p7 }
 0x214   : > { %p542_p9 = pneg %p541_p4 }
 0x216   : > { %p547_p11 = pnand %p546_p6, %p542_p9 }
 0x218   : > { %550 = shalt.err (!%p547_p11)
}
 0x219   : > { %449 = dma.vmem_to_hbm [thread:$0]  (%p802_p12), %s362_s10, 16, %s749_s23, %s349_s25  }
 0x21a PF: > { %s373_s7 = sand.u32 1, %s577_s18   ;;  %p803_p13 = scmp.ne.s32.totalorder %s797_s6, 0 }
 0x21b   : > { %p804_p1 = scmp.ge.s32.totalorder %s589_s21, 2  ;;  %s374_s9 = scalar_lea.sflag [#allocation4], %s373_s7 }
 0x21d   : > { %p456_p3 = pnand %p804_p1, %p803_p13 }
 0x21f   : > { %p457_p5 = pneg %p456_p3 }
 0x221   : > { %572 = dma.done.wait (%p457_p5), %s374_s9, 16  }
 0x222   : > { %574 = vsyncadd (%p457_p5), %s374_s9, 4294967280  ;;  %p18_p8 = scmp.ge.s32.totalorder %s651_s24, 4   ;;  %s805_s18 = smov %s581_s19 }
 0x223   : > { %s806_s19 = smov %s585_s20  ;;  %s807_s20 = smov %s663_s27 }
 0x224   : > { %s808_s21 = smov %s651_s24  ;;  %20 = sbr.rel (!%p18_p8) target bundleno = 5 (0x5), region = 85 }
 0x229   :  { %378 = vsyncpa [#allocation3], 1 }
 0x22a   :  { %380 = vsyncpa [#allocation3 + $0x1], 1 }
 0x22b   :  { %381 = vsyncpa [#allocation4], 1 }
 0x22c   :  { %383 = vsyncpa [#allocation4 + $0x1], 1 }

</bundles_post_ra>
